<compile_context>
chip_gen: v7x
topology: tpu7x:2x2x1
jax: 0.10.0
libtpu: 0.0.40
codegen_flags: <defaults>
</compile_context>

<pallas_src>
import functools

import numpy as np
import jax
import jax.numpy as jnp
from jax.experimental import pallas as pl
from jax.experimental.pallas import tpu as pltpu


def _round_up(x, m):
    return (x + m - 1) // m * m


# ---------------------------------------------------------------------------
# Kernel 1: tiled matmul  x = mat @ W   (MXU, f32 accumulation, weight resident)
# with fused BatchNorm partial statistics (per-tile column sum / sum-of-squares).
# ---------------------------------------------------------------------------
def _matmul_bnstats_kernel(mat_ref, w_ref, x_ref, sum_ref, sumsq_ref):
    x = jnp.dot(mat_ref[...], w_ref[...], preferred_element_type=jnp.float32)
    x_ref[...] = x
    # Zero-padded batch rows produce exactly-zero x rows, so they contribute 0 to both
    # partials; reducing these over tiles and dividing by the real B reproduces
    # PyTorch training-mode BatchNorm batch statistics.
    sum_ref[...] = jnp.sum(x, axis=0)[None, None, :]
    sumsq_ref[...] = jnp.sum(x * x, axis=0)[None, None, :]


# ---------------------------------------------------------------------------
# Kernel 2 (only used when E % 128 == 0, i.e. lane-dense output blocks):
# fused BatchNorm-apply (precomputed scale/shift) + LeakyReLU (VPU).
# ---------------------------------------------------------------------------
def _bn_lrelu_kernel(x_ref, scale_ref, shift_ref, out_ref):
    y = x_ref[...] * scale_ref[...] + shift_ref[...]
    out_ref[...] = jnp.where(y >= 0.0, y, 0.01 * y)   # LeakyReLU(negative_slope=0.01)


@functools.partial(jax.jit, static_argnames=("tile_m", "use_bf16"))
def mean_aggregator_forward(raw_features, neigh_ids, use_mean, weight,
                            gamma, beta, *, tile_m=512, use_bf16=True):
    B = neigh_ids.shape[0]
    D = raw_features.shape[1]
    K = 7 * D
    E = weight.shape[1]
    compute_dtype = jnp.bfloat16 if use_bf16 else jnp.float32

    # --- vectorized ragged-neighbor gather (one XLA gather for the whole batch) -----
    # The slot-7 "mean of the 6 neighbors" rule is a mask.  (For large D this gather
    # would move inside the matmul kernel via scalar-prefetched ids + manual DMA; for
    # small D a single fused XLA gather is the right choice.)
    feats = jnp.take(raw_features, neigh_ids, axis=0)            # (B, 7, D)
    mean6 = jnp.mean(feats[:, :6, :], axis=1)                    # (B, D), f32
    slot7 = jnp.where(use_mean[:, None], mean6, feats[:, 6, :])  # 6-neigh nodes -> mean
    feats = feats.at[:, 6, :].set(slot7)
    # Cast to the MXU input dtype here so it fuses with the gather (no standalone
    # astype pass).  No K zero-pad: full-extent block dims are lane-rule exempt.
    mat = feats.reshape(B, K).astype(compute_dtype)
    w = weight.astype(compute_dtype)

    # --- B tiling: multiple of 16 sublanes (f32 & bf16 safe), >= 2 grid steps --------
    tm = max(16, min(tile_m, _round_up(pl.cdiv(B, 2), 16)))
    B_pad = max(_round_up(B, tm), 2 * tm)   # force nbt >= 2: pipelining + v7x megacore
    nbt = B_pad // tm
    mat = jnp.pad(mat, ((0, B_pad - B), (0, 0)))   # zero rows -> zero BN partials

    in_size = jnp.dtype(compute_dtype).itemsize
    vmem_est = (3 * tm * K * in_size          # mat tiles (double-buffer + headroom)
                + 2 * K * E * in_size         # resident weight allocation
                + 3 * tm * E * 4              # x output tiles
                + 6 * E * 4)                  # tiny stat outputs
    vmem_limit = int(min(max(2 * vmem_est, 32 << 20), 64 << 20))  # cap: v7x 64 MiB/TC

    # Weight block is grid-invariant (index_map -> (0,0)): it is DMA'd only once.  Ask
    # for a single VMEM buffer only when it is big enough to threaten the v7x budget.
    if K * E * in_size > (8 << 20):
        w_spec = pl.BlockSpec((K, E), lambda i: (0, 0), pipeline_mode=pl.Buffered(1))
    else:
        w_spec = pl.BlockSpec((K, E), lambda i: (0, 0))

    cost = pl.CostEstimate(
        flops=2 * B_pad * K * E,
        transcendentals=0,
        bytes_accessed=(B_pad * K * in_size + K * E * in_size
                        + B_pad * E * 4 + 2 * nbt * E * 4),
    )

    x, tile_sum, tile_sumsq = pl.pallas_call(
        _matmul_bnstats_kernel,
        out_shape=(jax.ShapeDtypeStruct((B_pad, E), jnp.float32),
                   jax.ShapeDtypeStruct((nbt, 1, E), jnp.float32),
                   jax.ShapeDtypeStruct((nbt, 1, E), jnp.float32)),
        grid=(nbt,),
        in_specs=[
            pl.BlockSpec((tm, K), lambda i: (i, 0)),   # mat tile, streamed over B
            w_spec,                                    # weight: resident across grid
        ],
        out_specs=(
            pl.BlockSpec((tm, E), lambda i: (i, 0)),
            pl.BlockSpec((1, 1, E), lambda i: (i, 0, 0)),
            pl.BlockSpec((1, 1, E), lambda i: (i, 0, 0)),
        ),
        compiler_params=pltpu.CompilerParams(
            dimension_semantics=("parallel",),
            vmem_limit_bytes=vmem_limit),
        cost_estimate=cost,
    )(mat, w)

    # --- BatchNorm training-mode statistics over the real batch ----------------------
    # Partial sums came out of the matmul epilogue (no extra HBM read pass over x);
    # padded rows contributed exactly zero, so divide by the real B.
    mean = jnp.sum(tile_sum, axis=(0, 1)) / B
    var = jnp.maximum(jnp.sum(tile_sumsq, axis=(0, 1)) / B - mean * mean, 0.0)
    inv_std = jax.lax.rsqrt(var + 1e-5)
    scale = gamma * inv_std                 # gamma folded into per-column scale
    shift = beta - mean * scale             # beta folded into per-column shift
    # TODO(synk): BatchNorm1d running_mean/running_var updates are stateful training
    # bookkeeping and do not affect this forward output; not modeled here.

    if E % 128 == 0:
        # Lane-dense output blocks -> unmasked 128-lane stores: keep the fused Pallas
        # BN-apply + LeakyReLU epilogue.
        out = pl.pallas_call(
            _bn_lrelu_kernel,
            out_shape=jax.ShapeDtypeStruct((B_pad, E), jnp.float32),
            grid=(nbt,),
            in_specs=[
                pl.BlockSpec((tm, E), lambda i: (i, 0)),
                pl.BlockSpec((1, E), lambda i: (0, 0)),
                pl.BlockSpec((1, E), lambda i: (0, 0)),
            ],
            out_specs=pl.BlockSpec((tm, E), lambda i: (i, 0)),
            compiler_params=pltpu.CompilerParams(
                dimension_semantics=("parallel",),
                vmem_limit_bytes=vmem_limit),
        )(x, scale.reshape(1, E), shift.reshape(1, E))
        return out[:B]

    # E < 128: a dedicated Pallas epilogue would do masked vst.msk partial stores and
    # waste the padded rows; let XLA fuse the tiny elementwise BN-apply + LeakyReLU
    # with the final un-pad slice instead.
    y = x[:B] * scale[None, :] + shift[None, :]
    return jnp.where(y >= 0.0, y, 0.01 * y)


def prepare_neighbor_table(to_neighs):
    """Convert ragged Python neighbor sets/lists into a dense (B, 7) id table plus a
    mask marking nodes whose 7th slot must be the mean of the first 6 rows.
    Pure host-side integer work; no per-node device dispatches."""
    B = len(to_neighs)
    ids = np.zeros((B, 7), dtype=np.int32)
    use_mean = np.zeros((B,), dtype=bool)
    for i, samp_neigh in enumerate(to_neighs):
        lst = list(samp_neigh)
        if len(lst) == 7:
            ids[i, :] = lst
        elif len(lst) == 6:
            ids[i, :6] = lst
            ids[i, 6] = lst[0]          # placeholder; replaced in-graph by the mean
            use_mean[i] = True
        else:
            raise ValueError(
                f"node {i}: MeanAggregator requires 6 or 7 neighbors, got {len(lst)}")
    return jnp.asarray(ids), jnp.asarray(use_mean)


def _reference_forward(raw_features, to_neighs, weight, gamma, beta):
    """Pure-NumPy replica of the PyTorch forward for correctness checking."""
    raw = np.asarray(raw_features)
    rows = []
    for samp_neigh in to_neighs:
        nm = raw[np.asarray(list(samp_neigh), dtype=np.int64)]
        if nm.shape[0] == 6:
            nm = np.concatenate([nm, nm.mean(axis=0, keepdims=True)], axis=0)
        rows.append(nm.reshape(1, -1))
    mat = np.concatenate(rows, axis=0)
    x = mat @ np.asarray(weight)
    mean = x.mean(axis=0)
    var = ((x - mean) ** 2).mean(axis=0)
    xh = (x - mean) / np.sqrt(var + 1e-5)
    y = xh * np.asarray(gamma) + np.asarray(beta)
    return np.where(y >= 0, y, 0.01 * y)


if __name__ == "__main__":
    key = jax.random.PRNGKey(0)
    feat_dim = 16
    num_total_nodes, batch = 64, 8

    k1, k2, k3, k4 = jax.random.split(key, 4)

    # raw node feature table
    raw_features = jax.random.normal(k1, (num_total_nodes, feat_dim), dtype=jnp.float32)

    # deterministic neighbor lists: alternate 6- and 7-neighbor nodes
    neigh_pool = np.asarray(jax.random.randint(k2, (batch, 7), 0, num_total_nodes))
    to_neighs = [[int(v) for v in neigh_pool[i, :(6 if i % 2 == 0 else 7)]]
                 for i in range(batch)]
    neigh_ids, use_mean = prepare_neighbor_table(to_neighs)

    def make_params(kw, embed_dim):
        # Xavier-uniform init of weight (7*feat_dim, embed_dim), as in __init__
        fan_in, fan_out = 7 * feat_dim, embed_dim
        bound = float(np.sqrt(6.0 / (fan_in + fan_out)))
        weight = jax.random.uniform(kw, (fan_in, fan_out), minval=-bound,
                                    maxval=bound, dtype=jnp.float32)
        # BatchNorm1d affine params at init: gamma=1, beta=0
        gamma = jnp.ones((embed_dim,), jnp.float32)
        beta = jnp.zeros((embed_dim,), jnp.float32)
        return weight, gamma, beta

    # --- embed_dim = 32 (E < 128 -> XLA-fused elementwise epilogue path) ------------
    weight, gamma, beta = make_params(k3, 32)
    ref = _reference_forward(raw_features, to_neighs, weight, gamma, beta)

    out_f32 = mean_aggregator_forward(raw_features, neigh_ids, use_mean,
                                      weight, gamma, beta, use_bf16=False)
    jax.block_until_ready(out_f32)
    assert out_f32.shape == (batch, 32) and out_f32.dtype == jnp.float32
    np.testing.assert_allclose(np.asarray(out_f32), ref, rtol=2e-3, atol=2e-3)

    # Default bf16 MXU-input path (f32 accumulation): small documented drift vs the
    # f32 PyTorch reference, hence the looser tolerance.
    out_bf16 = mean_aggregator_forward(raw_features, neigh_ids, use_mean,
                                       weight, gamma, beta, use_bf16=True)
    jax.block_until_ready(out_bf16)
    assert out_bf16.shape == (batch, 32) and out_bf16.dtype == jnp.float32
    np.testing.assert_allclose(np.asarray(out_bf16), ref, rtol=5e-2, atol=8e-2)

    # --- embed_dim = 128 (lane-dense fused Pallas BN+LeakyReLU epilogue path) -------
    weight2, gamma2, beta2 = make_params(k4, 128)
    ref2 = _reference_forward(raw_features, to_neighs, weight2, gamma2, beta2)
    out2 = mean_aggregator_forward(raw_features, neigh_ids, use_mean,
                                   weight2, gamma2, beta2, use_bf16=False)
    jax.block_until_ready(out2)
    assert out2.shape == (batch, 128) and out2.dtype == jnp.float32
    np.testing.assert_allclose(np.asarray(out2), ref2, rtol=2e-3, atol=2e-3)

    print("KERNEL_OK")
</pallas_src>

<mosaic_0001>
module attributes {stable_mosaic.version = 11 : i64} {
  func.func @_matmul_bnstats_kernel(%arg0: i32, %arg1: memref<16x112xf32, #tpu.memory_space<vmem>>, %arg2: memref<112x32xf32, #tpu.memory_space<vmem>>, %arg3: memref<16x32xf32, #tpu.memory_space<vmem>>, %arg4: memref<1x1x32xf32, #tpu.memory_space<vmem>>, %arg5: memref<1x1x32xf32, #tpu.memory_space<vmem>>) attributes {dimension_semantics = [#tpu.dimension_semantics<parallel>], iteration_bounds = array<i64: 2>, scalar_prefetch = 0 : i64, scratch_operands = 0 : i64, tpu.core_type = #tpu.core_type<tc>, window_params = [{transform_indices = @transform_0, window_bounds = array<i64: 16, 112>}, {pipeline_mode = #tpu.pipeline_mode<synchronous>, transform_indices = @transform_1, window_bounds = array<i64: 112, 32>}, {transform_indices = @transform_2, window_bounds = array<i64: 16, 32>}, {transform_indices = @transform_3, window_bounds = array<i64: 1, 1, 32>}, {transform_indices = @transform_4, window_bounds = array<i64: 1, 1, 32>}]} {
    %c0 = arith.constant 0 : index
    %c0_0 = arith.constant 0 : index
    %0 = vector.load %arg1[%c0, %c0_0] : memref<16x112xf32, #tpu.memory_space<vmem>>, vector<16x112xf32>
    %c0_1 = arith.constant 0 : index
    %c0_2 = arith.constant 0 : index
    %1 = vector.load %arg2[%c0_1, %c0_2] : memref<112x32xf32, #tpu.memory_space<vmem>>, vector<112x32xf32>
    %cst = arith.constant dense<0.000000e+00> : vector<16x32xf32>
    %2 = tpu.matmul %0, %1, %cst {dimension_numbers = #tpu.dot_dimension_numbers<[1], [0], [0], [1], [0, 0, 1, 1], [], []>} : vector<16x112xf32>, vector<112x32xf32>, vector<16x32xf32> -> vector<16x32xf32>
    %c0_3 = arith.constant 0 : index
    %c0_4 = arith.constant 0 : index
    %3 = vector.load %arg3[%c0_3, %c0_4] : memref<16x32xf32, #tpu.memory_space<vmem>>, vector<16x32xf32>
    tpu.vector_store %arg3[%c0_3, %c0_4], %2 {strides = array<i32>} : memref<16x32xf32, #tpu.memory_space<vmem>>, vector<16x32xf32>,
    %cst_5 = arith.constant dense<0.000000e+00> : vector<32xf32>
    %4 = vector.multi_reduction <add>, %2, %cst_5 [0] : vector<16x32xf32> to vector<32xf32>
    %5 = vector.shape_cast %4 : vector<32xf32> to vector<1x1x32xf32>
    %c0_6 = arith.constant 0 : index
    %c0_7 = arith.constant 0 : index
    %c0_8 = arith.constant 0 : index
    %6 = vector.load %arg4[%c0_6, %c0_7, %c0_8] : memref<1x1x32xf32, #tpu.memory_space<vmem>>, vector<1x1x32xf32>
    tpu.vector_store %arg4[%c0_6, %c0_7, %c0_8], %5 {strides = array<i32>} : memref<1x1x32xf32, #tpu.memory_space<vmem>>, vector<1x1x32xf32>,
    %7 = arith.mulf %2, %2 : vector<16x32xf32>
    %cst_9 = arith.constant dense<0.000000e+00> : vector<32xf32>
    %8 = vector.multi_reduction <add>, %7, %cst_9 [0] : vector<16x32xf32> to vector<32xf32>
    %9 = vector.shape_cast %8 : vector<32xf32> to vector<1x1x32xf32>
    %c0_10 = arith.constant 0 : index
    %c0_11 = arith.constant 0 : index
    %c0_12 = arith.constant 0 : index
    %10 = vector.load %arg5[%c0_10, %c0_11, %c0_12] : memref<1x1x32xf32, #tpu.memory_space<vmem>>, vector<1x1x32xf32>
    tpu.vector_store %arg5[%c0_10, %c0_11, %c0_12], %9 {strides = array<i32>} : memref<1x1x32xf32, #tpu.memory_space<vmem>>, vector<1x1x32xf32>,
    return
  }
  func.func @transform_0(%arg0: i32) -> (i32, i32) {
    %c0_i32 = arith.constant 0 : i32
    %c0_i32_0 = arith.constant 0 : i32
    return %arg0, %c0_i32 : i32, i32
  }
  func.func @transform_1(%arg0: i32) -> (i32, i32) {
    %c0_i32 = arith.constant 0 : i32
    %c0_i32_0 = arith.constant 0 : i32
    %c0_i32_1 = arith.constant 0 : i32
    return %c0_i32, %c0_i32_0 : i32, i32
  }
  func.func @transform_2(%arg0: i32) -> (i32, i32) {
    %c0_i32 = arith.constant 0 : i32
    %c0_i32_0 = arith.constant 0 : i32
    return %arg0, %c0_i32 : i32, i32
  }
  func.func @transform_3(%arg0: i32) -> (i32, i32, i32) {
    %c0_i32 = arith.constant 0 : i32
    %c0_i32_0 = arith.constant 0 : i32
    %c0_i32_1 = arith.constant 0 : i32
    return %arg0, %c0_i32, %c0_i32_0 : i32, i32, i32
  }
  func.func @transform_4(%arg0: i32) -> (i32, i32, i32) {
    %c0_i32 = arith.constant 0 : i32
    %c0_i32_0 = arith.constant 0 : i32
    %c0_i32_1 = arith.constant 0 : i32
    return %arg0, %c0_i32, %c0_i32_0 : i32, i32, i32
  }
}

</mosaic_0001>

<bundles_post_ra>
// kernel: mean_aggregator_forward.1
= control target key start
LH: loop header
LB: loop body
LE: loop exit
PB: predicated region body
PF: predicated region fallthrough
CT: control target
= control target key end

     0   :  { %s577_s15 = smov 0   ;;  %s656_s0 = inlined_call_operand.vmem [shape: f32[32,112], index: 0, kind: input, shape index: {}]   ;;  %s657_s1 = inlined_call_operand.vmem [shape: f32[112,32], index: 1, kind: input, shape index: {}]   ;;  %s658_s2 = inlined_call_operand.vmem [shape: f32[32,32], index: 2, kind: output, shape index: {0}]   ;;  %s659_s3 = inlined_call_operand.vmem [shape: f32[2,1,32], index: 3, kind: output, shape index: {1}]   ;;  %s660_s4 = inlined_call_operand.vmem [shape: f32[2,1,32], index: 4, kind: output, shape index: {2}]  }
   0x1 LB: > { %s583_s16 = sadd.s32 4294967295, %s550_s15   ;;  %p452_p0 = scmp.ge.s32.totalorder %s550_s15, 1  ;;  %s550_s15 = sphi %s577_s15, %s15_s15  }
   0x2   : > { %p168_p1 = scmp.lt.s32.totalorder %s550_s15, 3 }
   0x4   : > { %p169_p2 = pnand %p452_p0, %p168_p1 }
   0x5   : > { %v220_v0 = vld [vmem:[%s657_s1] sm:$0xff] (!%p169_p2)  ;;  %v221_v1 = vld [vmem:[%s657_s1 + $0x8] sm:$0xff] (!%p169_p2)  ;;  %v222_v2 = vld [vmem:[%s657_s1 + $0x10] sm:$0xff] (!%p169_p2)  ;;  %s453_s23 = sshll.u32 (!%p169_p2), %s583_s16, 1  ;;  %vm234_vm0 = vcmask (!%p169_p2), 916480   ;;  %vm316_vm1 = vcmask (!%p169_p2), 261120  }
   0x6   : > { %172 = sbr.rel (%p169_p2) target bundleno = 267 (0x10b), region = 28  ;;  %v508_v3 = vpack.c.bf16 (!%p169_p2), %v221_v1, %v220_v0  ;;  %v223_v4 = vld [vmem:[%s657_s1 + $0x18] sm:$0xff] (!%p169_p2)  ;;  %p201_p3 = scmp.lt.s32.totalorder (!%p169_p2), %s453_s23, 3  ;;  %v224_v6 = vld [vmem:[%s657_s1 + $0x20] sm:$0xff] (!%p169_p2)  ;;  %v225_v7 = vld [vmem:[%s657_s1 + $0x28] sm:$0xff] (!%p169_p2)  ;;  %vm328_vm2 = vcmask (!%p169_p2), 253952  }
   0x7   : > { %v512_v5 = vpack.c.bf16 (!%p169_p2), %v223_v4, %v222_v2  ;;  %v516_v8 = vpack.c.bf16 (!%p169_p2), %v225_v7, %v224_v6  ;;  %v226_v9 = vld [vmem:[%s657_s1 + $0x30] sm:$0xff] (!%p169_p2)  ;;  %v227_v10 = vld [vmem:[%s657_s1 + $0x38] sm:$0xff] (!%p169_p2)  ;;  %v228_v13 = vld [vmem:[%s657_s1 + $0x40] sm:$0xff] (!%p169_p2)  ;;  %p212_p4 = scmp.lt.s32.totalorder (!%p169_p2), %s583_s16, 1 }
   0x8   : > { %509 = vmatprep.subr.bf16.mxu0 (!%p169_p2), %v508_v3  ;;  %v520_v12 = vpack.c.bf16 (!%p169_p2), %v227_v10, %v226_v9  ;;  %v229_v14 = vld [vmem:[%s657_s1 + $0x48] sm:$0xff] (!%p169_p2)  ;;  %v230_v16 = vld [vmem:[%s657_s1 + $0x50] sm:$0xff] (!%p169_p2)  ;;  %v231_v17 = vld [vmem:[%s657_s1 + $0x58] sm:$0xff] (!%p169_p2) }
   0x9   : > { %511 = vmatpush3.bf16.msra.mxu0 (!%p169_p2), %v508_v3  ;;  %v524_v15 = vpack.c.bf16 (!%p169_p2), %v229_v14, %v228_v13  ;;  %v528_v18 = vpack.c.bf16 (!%p169_p2), %v231_v17, %v230_v16  ;;  %v232_v19 = vld [vmem:[%s657_s1 + $0x60] sm:$0xff] (!%p169_p2)  ;;  %v233_v20 = vld [vmem:[%s657_s1 + $0x68] sm:$0xff] (!%p169_p2) }
   0xa   : > { %513 = vmatprep.subr.bf16.mxu0 (!%p169_p2), %v512_v5  ;;  %v532_v21 = vpack.c.bf16 (!%p169_p2), %v233_v20, %v232_v19 }
   0xd   : > { %s662_s23 = smov (!%p201_p3, %s453_s23), 3  ;;  %515 = vmatpush3.bf16.msra.mxu0 %v512_v5  ;;  %s664_s16 = smov (!%p212_p4, %s583_s16), 1 }
   0xe   : > { %s454_s30 = sshll.u32 %s662_s23, 3  ;;  %517 = vmatprep.subr.bf16.mxu0 %v516_v8  ;;  %s214_s5 = scalar_lea.vmem %s659_s3, %s664_s16 }
   0xf   : > { %s204_s11 = scalar_lea.vmem %s656_s0, %s454_s30  ;;  %s210_s29 = scalar_lea.vmem %s658_s2, %s454_s30 }
  0x10   : > { %v218_v11 = vld [vmem:[%s204_s11] sm:$0xff]  ;;  %v219_v22 = vld [vmem:[%s204_s11 + $0x8] sm:$0xff]  ;;  %s217_s8 = scalar_lea.vmem %s660_s4, %s664_s16 }
  0x11   : > { %505 = vmatprep.mubr.msk.f32.mxu0 %vm234_vm0, %v218_v11  ;;  %519 = vmatpush3.bf16.msra.mxu0 %v516_v8 }
  0x12   : > { %521 = vmatprep.subr.bf16.mxu0 %v520_v12 }
  0x15   : > { %523 = vmatpush3.bf16.msra.mxu0 %v520_v12 }
  0x16   : > { %525 = vmatprep.subr.bf16.mxu0 %v524_v15 }
  0x19   : > { %527 = vmatpush3.bf16.msra.mxu0 %v524_v15 }
  0x1a   : > { %529 = vmatprep.subr.bf16.mxu0 %v528_v18 }
  0x1d   : > { %531 = vmatpush3.bf16.msra.mxu0 %v528_v18 }
  0x1e   : > { %533 = vmatprep.subr.bf16.mxu0 %v532_v21 }
  0x21   : > { %535 = vmatpush3.bf16.msra.mxu0 %v532_v21 }
  0x24   : > { %506 = vmatmul.mubr.msk.f32.vlgmr.msra.gmra.mrb[0].mxu0 %vm234_vm0, %v219_v22 }
  0xf7   : > { %v507_v23 = vpop.f32.mrb[0].mxu0 }
  0xf8   : > { %v320_v24 = vsel %vm316_vm1, %v507_v23, 0.0  ;;  %v331_v25 = vmul.f32 %v507_v23, %v507_v23  ;;  %v307_v26 = vpop.f32.mrb[1].mxu0  ;;  %318 = vst.msk [vmem:[%s210_s29 + $0x8] sm:$0xff] %vm316_vm1, %v507_v23 }
  0xf9   : > { %317 = vst.msk [vmem:[%s210_s29] sm:$0xff] %vm316_vm1, %v307_v26  ;;  %v319_v27 = vsel %vm316_vm1, %v307_v26, 0.0  ;;  %v330_v28 = vmul.f32 %v307_v26, %v307_v26 }
  0xfa   : > { %v333_v29 = vsel %vm316_vm1, %v331_v25, 0.0  ;;  %v321_v30 = vadd.f32 %v320_v24, %v319_v27 }
  0xfb   : > { %v332_v31 = vsel %vm316_vm1, %v330_v28, 0.0 }
  0xfc   : > { %v322_v32 = vrot.slane %v321_v30, 4  ;;  %v334_v33 = vadd.f32 %v333_v29, %v332_v31 }
  0xfe   : > { %v323_v34 = vadd.f32 %v322_v32, %v321_v30  ;;  %v335_v35 = vrot.slane %v334_v33, 4 }
 0x100   : > { %v324_v36 = vrot.slane %v323_v34, 2  ;;  %v336_v37 = vadd.f32 %v335_v35, %v334_v33 }
 0x102   : > { %v325_v38 = vadd.f32 %v324_v36, %v323_v34  ;;  %v337_v39 = vrot.slane %v336_v37, 2 }
 0x104   : > { %v326_v40 = vrot.slane %v325_v38, 1  ;;  %v338_v41 = vadd.f32 %v337_v39, %v336_v37 }
 0x106   : > { %v327_v42 = vadd.f32 %v326_v40, %v325_v38  ;;  %v339_v43 = vrot.slane %v338_v41, 1 }
 0x108   : > { %329 = vst.msk [vmem:[%s214_s5] sm:$0x1] %vm328_vm2, %v327_v42  ;;  %v340_v44 = vadd.f32 %v339_v43, %v338_v41 }
 0x10a   : > { %341 = vst.msk [vmem:[%s217_s8] sm:$0x1] %vm328_vm2, %v340_v44 }
 0x10b PF: > { %s15_s15 = sadd.s32 1, %s550_s15  }
 0x10c   : > { %p12_p5 = scmp.ge.s32.totalorder %s15_s15, 4  }
 0x10e   :  { %14 = sbr.rel (!%p12_p5) target bundleno = 1 (0x1), region = 82 }

</bundles_post_ra>
